<compile_context>
chip_gen: v5e
topology: v5e:2x2
jax: 0.10.0
libtpu: 0.0.40
codegen_flags: <defaults>
</compile_context>

<pallas_src>
import functools
import math

import jax
import jax.numpy as jnp
from jax.experimental import pallas as pl
from jax.experimental.pallas import tpu as pltpu


# ----------------------------------------------------------------------------
# Parameter / embedding construction (plain JAX; mirrors Rotary.__init__ and
# Rotary.make_emb exactly).
# ----------------------------------------------------------------------------
def make_freq(dim_in: int) -> jnp.ndarray:
    # torch.arange(0, -1, -2/dim_in) -> ceil(dim_in/2) exponents 0, -2/d, ...
    n = (dim_in + 1) // 2
    exps = -2.0 * jnp.arange(n, dtype=jnp.float32) / float(dim_in)
    freq = jnp.power(jnp.float32(10000.0), exps)
    # torch.cat((freq, freq[:n - dim_in % 2])) -> length dim_in
    return jnp.concatenate([freq, freq[: n - dim_in % 2]], axis=0)


def make_emb(freq: jnp.ndarray, dim_seq: int, dim_in: int):
    i = jnp.arange(dim_seq, dtype=freq.dtype)
    emb = (i[:, None] * freq[None, :]).reshape(1, dim_seq, 1, dim_in)
    return jnp.cos(emb), jnp.sin(emb)


# ----------------------------------------------------------------------------
# Kernels
# ----------------------------------------------------------------------------
def _rotary_kernel_head_major(x_ref, cos_ref, sin_ref, o_ref):
    """D % 128 == 0 path.  Blocks: x (st, H, D); cos/sin (st, 1, D), sign-folded sin."""
    x = x_ref[...].astype(jnp.float32)
    cos = cos_ref[...].astype(jnp.float32)
    sin = sin_ref[...].astype(jnp.float32)          # rotate_half sign already folded in
    d = x.shape[-1]
    # Cyclic shift by D/2 along the head dim == rotate_half up to the folded sign
    # (shift of exactly half the axis length is roll-direction symmetric).
    rot = pltpu.roll(x, d // 2, x.ndim - 1)
    o_ref[...] = (x * cos + rot * sin).astype(o_ref.dtype)


def _rotary_kernel_lane_dense(x_ref, cos_ref, sin_ref, o_ref, *, head_dim, emb_reps):
    """Lane-dense path.  Blocks: x (st, H*D); cos/sin (st, P) with P = lcm(D,128),
    sign folded into sin.  H*D is a multiple of 128 so loads/stores are unmasked."""
    x = x_ref[...].astype(jnp.float32)              # (st, HD)
    cos = cos_ref[...].astype(jnp.float32)          # (st, P)
    sin = sin_ref[...].astype(jnp.float32)          # (st, P)
    if emb_reps > 1:
        # Replicate the P-lane period across the full HD width.  P is a multiple
        # of 128, so this is whole-vreg copies (no cross-lane movement).
        cos = jnp.concatenate([cos] * emb_reps, axis=-1)
        sin = jnp.concatenate([sin] * emb_reps, axis=-1)

    hd = x.shape[-1]
    half = head_dim // 2
    axis = x.ndim - 1

    # rotate_half (sans sign) via two opposite full-width XLU lane rotations; per
    # lane we pick the roll whose source lane lives in the *same* head block.
    # The mask comes from a rolled iota, so correctness does not depend on the
    # pltpu.roll direction convention; the same-block test is a single xor
    # compare for power-of-two head dims.
    r_a = pltpu.roll(x, half, axis)
    r_b = pltpu.roll(x, hd - half, axis)
    lane = jax.lax.broadcasted_iota(jnp.int32, x.shape, axis)
    src_a = pltpu.roll(lane, half, axis)
    if head_dim & (head_dim - 1) == 0:
        same_a = (src_a ^ lane) < head_dim
    else:
        same_a = (src_a // head_dim) == (lane // head_dim)
    rot = jnp.where(same_a, r_a, r_b)

    o_ref[...] = (x * cos + rot * sin).astype(o_ref.dtype)


def _rotary_kernel_fallback(x_ref, cos_ref, sin_ref, o_ref):
    """Fallback: (B, st, H, D) blocks, concat-based rotate_half (handles odd D)."""
    x = x_ref[...].astype(jnp.float32)              # (B, st, H, D)
    cos = cos_ref[...].astype(jnp.float32)          # (1, st, 1, D)
    sin = sin_ref[...].astype(jnp.float32)
    d = x.shape[-1]
    half = (d + 1) // 2                             # torch.chunk(2,-1): first chunk is ceil(d/2)
    x1 = x[..., :half]
    x2 = x[..., half:]
    rot = jnp.concatenate([-x2, x1], axis=-1)
    o_ref[...] = (x * cos + rot * sin).astype(o_ref.dtype)


# ----------------------------------------------------------------------------
# Wrapper
# ----------------------------------------------------------------------------
_VMEM_LIMIT = 48 * 1024 * 1024      # fits v5e/v6e (128 MiB) and v7x (64 MiB / TC)


def _pick_seq_tile(seq_len, row_bytes, target_bytes=2 << 20):
    """Seq rows per block: multiple of 8 (or the full seq dim), ~target_bytes/block."""
    if seq_len <= 8:
        return seq_len
    t = max(8, min(seq_len, target_bytes // max(1, row_bytes)))
    t = (t // 8) * 8
    return max(8, min(t, seq_len))


def rotary_forward(x, emb_cos, emb_sin):
    """x: (B, S, H, D); emb_cos/emb_sin: (1, S, 1, D) (torch broadcasting layout)."""
    B, S, H, D = x.shape
    hd = H * D
    itemsize = x.dtype.itemsize
    # Ship cos/sin in the activation dtype when it is narrower than f32 (halves
    # emb HBM bytes for bf16/f16 inputs); arithmetic stays f32 in-kernel.
    emb_dtype = x.dtype if (jnp.issubdtype(x.dtype, jnp.floating) and itemsize < 4) else jnp.float32
    cos2d = emb_cos.reshape(S, D).astype(jnp.float32)
    sin2d = emb_sin.reshape(S, D).astype(jnp.float32)

    if D % 128 == 0:
        # ---- Head-major path: per-head (1, S, 1, D) cos/sin, single D/2 roll.
        half = D // 2
        sign = jnp.where(jnp.arange(D) < half, -1.0, 1.0).astype(jnp.float32)
        cos4 = cos2d.reshape(1, S, 1, D).astype(emb_dtype)
        sin4 = (sin2d * sign[None, :]).reshape(1, S, 1, D).astype(emb_dtype)

        st = _pick_seq_tile(S, hd * itemsize)
        grid = (pl.cdiv(S, st), B)                  # batch innermost -> emb blocks reused
        x_spec = pl.BlockSpec((None, st, H, D), lambda s, b: (b, s, 0, 0))
        e_spec = pl.BlockSpec((None, st, 1, D), lambda s, b: (0, s, 0, 0))

        return pl.pallas_call(
            _rotary_kernel_head_major,
            out_shape=jax.ShapeDtypeStruct((B, S, H, D), x.dtype),
            grid_spec=pltpu.PrefetchScalarGridSpec(
                num_scalar_prefetch=0,
                grid=grid,
                in_specs=[x_spec, e_spec, e_spec],
                out_specs=x_spec,
            ),
            compiler_params=pltpu.CompilerParams(
                dimension_semantics=("parallel", "parallel"),
                vmem_limit_bytes=_VMEM_LIMIT,
            ),
        )(x, cos4, sin4)

    if D % 2 == 0 and hd % 128 == 0:
        # ---- Lane-dense path: x reshaped (B, S, H*D) so stores fill 128 lanes.
        half = D // 2
        sign = jnp.where(jnp.arange(D) < half, -1.0, 1.0).astype(jnp.float32)
        # cos/sin are shipped one lane-aligned period wide (lcm(D,128) lanes) and
        # replicated across heads *in-kernel*; no H-fold materialization in HBM.
        p = D * 128 // math.gcd(D, 128)
        if hd % p != 0:
            p = hd                                  # rare; fall back to full-width emb
        reps_w = p // D
        cos_p = jnp.tile(cos2d, (1, reps_w)).reshape(1, S, p).astype(emb_dtype)
        sin_p = jnp.tile(sin2d * sign[None, :], (1, reps_w)).reshape(1, S, p).astype(emb_dtype)
        x3 = x.reshape(B, S, hd)

        st = _pick_seq_tile(S, hd * itemsize)
        grid = (pl.cdiv(S, st), B)                  # batch innermost -> emb blocks reused
        x_spec = pl.BlockSpec((None, st, hd), lambda s, b: (b, s, 0))
        e_spec = pl.BlockSpec((None, st, p), lambda s, b: (0, s, 0))

        out = pl.pallas_call(
            functools.partial(_rotary_kernel_lane_dense, head_dim=D, emb_reps=hd // p),
            out_shape=jax.ShapeDtypeStruct((B, S, hd), x.dtype),
            grid_spec=pltpu.PrefetchScalarGridSpec(
                num_scalar_prefetch=0,
                grid=grid,
                in_specs=[x_spec, e_spec, e_spec],
                out_specs=x_spec,
            ),
            compiler_params=pltpu.CompilerParams(
                dimension_semantics=("parallel", "parallel"),
                vmem_limit_bytes=_VMEM_LIMIT,
            ),
        )(x3, cos_p, sin_p)
        return out.reshape(B, S, H, D)

    # ---- Fallback: odd D or H*D not a multiple of 128 — original layout with a
    # seq-tiled grid and concat-based rotate_half (correct, partially masked stores).
    cos4 = cos2d.reshape(1, S, 1, D).astype(emb_dtype)
    sin4 = sin2d.reshape(1, S, 1, D).astype(emb_dtype)
    row_bytes = B * H * D * itemsize
    st = max(1, min(S, (2 << 20) // max(1, row_bytes)))
    grid = (pl.cdiv(S, st),)
    x_spec = pl.BlockSpec((B, st, H, D), lambda s: (0, s, 0, 0))
    e_spec = pl.BlockSpec((1, st, 1, D), lambda s: (0, s, 0, 0))
    return pl.pallas_call(
        _rotary_kernel_fallback,
        out_shape=jax.ShapeDtypeStruct((B, S, H, D), x.dtype),
        grid_spec=pltpu.PrefetchScalarGridSpec(
            num_scalar_prefetch=0,
            grid=grid,
            in_specs=[x_spec, e_spec, e_spec],
            out_specs=x_spec,
        ),
        compiler_params=pltpu.CompilerParams(
            dimension_semantics=("parallel",),
            vmem_limit_bytes=_VMEM_LIMIT,
        ),
    )(x, cos4, sin4)


# ----------------------------------------------------------------------------
# Pure-JAX reference (silent correctness check).
# ----------------------------------------------------------------------------
def rotary_ref(x, emb_cos, emb_sin):
    d = x.shape[-1]
    half = (d + 1) // 2
    x1 = x[..., :half]
    x2 = x[..., half:]
    rot = jnp.concatenate([-x2, x1], axis=-1)
    return x * emb_cos + rot * emb_sin


def _check(B, S, H, D, key):
    x = jax.random.normal(key, (B, S, H, D), dtype=jnp.float32)
    freq = make_freq(D)
    emb_cos, emb_sin = make_emb(freq, S, D)
    out = jax.block_until_ready(rotary_forward(x, emb_cos, emb_sin))
    ref = rotary_ref(x, emb_cos, emb_sin)
    assert out.shape == (B, S, H, D)
    assert jnp.allclose(out, ref, atol=1e-5, rtol=1e-5), (B, S, H, D)


if __name__ == "__main__":
    key = jax.random.PRNGKey(0)
    k1, k2, k3, k4 = jax.random.split(key, 4)

    _check(2, 8, 4, 32, k1)     # lane-dense path, H*D = 128 (emb period == H*D)
    _check(2, 12, 8, 32, k2)    # lane-dense path, H*D = 256, in-kernel emb replication + ragged seq
    _check(2, 8, 2, 128, k3)    # head-major path (D % 128 == 0), single-roll rotate_half
    _check(2, 8, 3, 10, k4)     # fallback path (H*D not a multiple of 128)

    print("KERNEL_OK")
</pallas_src>

<mosaic_0001>
module attributes {stable_mosaic.version = 11 : i64} {
  func.func @_rotary_kernel_lane_dense(%arg0: i32, %arg1: i32, %arg2: memref<1x8x128xf32, #tpu.memory_space<vmem>>, %arg3: memref<1x8x128xf32, #tpu.memory_space<vmem>>, %arg4: memref<1x8x128xf32, #tpu.memory_space<vmem>>, %arg5: memref<1x8x128xf32, #tpu.memory_space<vmem>>) attributes {dimension_semantics = [#tpu.dimension_semantics<parallel>, #tpu.dimension_semantics<parallel>], iteration_bounds = array<i64: 1, 2>, scalar_prefetch = 0 : i64, scratch_operands = 0 : i64, tpu.core_type = #tpu.core_type<tc>, window_params = [{transform_indices = @transform_0, window_bounds = array<i64: 1, 8, 128>}, {transform_indices = @transform_1, window_bounds = array<i64: 1, 8, 128>}, {transform_indices = @transform_2, window_bounds = array<i64: 1, 8, 128>}, {transform_indices = @transform_3, window_bounds = array<i64: 1, 8, 128>}]} {
    %c0 = arith.constant 0 : index
    %c0_0 = arith.constant 0 : index
    %c0_1 = arith.constant 0 : index
    %0 = vector.load %arg2[%c0, %c0_0, %c0_1] : memref<1x8x128xf32, #tpu.memory_space<vmem>>, vector<1x8x128xf32>
    %1 = vector.shape_cast %0 : vector<1x8x128xf32> to vector<8x128xf32>
    %c0_2 = arith.constant 0 : index
    %c0_3 = arith.constant 0 : index
    %c0_4 = arith.constant 0 : index
    %2 = vector.load %arg3[%c0_2, %c0_3, %c0_4] : memref<1x8x128xf32, #tpu.memory_space<vmem>>, vector<1x8x128xf32>
    %3 = vector.shape_cast %2 : vector<1x8x128xf32> to vector<8x128xf32>
    %c0_5 = arith.constant 0 : index
    %c0_6 = arith.constant 0 : index
    %c0_7 = arith.constant 0 : index
    %4 = vector.load %arg4[%c0_5, %c0_6, %c0_7] : memref<1x8x128xf32, #tpu.memory_space<vmem>>, vector<1x8x128xf32>
    %5 = vector.shape_cast %4 : vector<1x8x128xf32> to vector<8x128xf32>
    %c16_i32 = arith.constant 16 : i32
    %6 = tpu.dynamic_rotate %1 by %c16_i32 dim 1 : vector<8x128xf32>, i32 -> vector<8x128xf32>
    %c112_i32 = arith.constant 112 : i32
    %7 = tpu.dynamic_rotate %1 by %c112_i32 dim 1 : vector<8x128xf32>, i32 -> vector<8x128xf32>
    %8 = tpu.iota {dimensions = array<i32: 1>} : vector<8x128xi32>
    %c16_i32_8 = arith.constant 16 : i32
    %9 = tpu.dynamic_rotate %8 by %c16_i32_8 dim 1 : vector<8x128xi32>, i32 -> vector<8x128xi32>
    %10 = arith.xori %9, %8 : vector<8x128xi32>
    %c32_i32 = arith.constant 32 : i32
    %11 = vector.broadcast %c32_i32 : i32 to vector<8x128xi32>
    %12 = arith.cmpi slt, %10, %11 : vector<8x128xi32>
    %13 = arith.select %12, %6, %7 : vector<8x128xi1>, vector<8x128xf32>
    %14 = arith.mulf %1, %3 : vector<8x128xf32>
    %15 = arith.mulf %13, %5 : vector<8x128xf32>
    %16 = arith.addf %14, %15 : vector<8x128xf32>
    %c0_9 = arith.constant 0 : index
    %c0_10 = arith.constant 0 : index
    %c0_11 = arith.constant 0 : index
    %17 = vector.load %arg5[%c0_9, %c0_10, %c0_11] : memref<1x8x128xf32, #tpu.memory_space<vmem>>, vector<1x8x128xf32>
    %18 = vector.shape_cast %17 : vector<1x8x128xf32> to vector<8x128xf32>
    %19 = vector.shape_cast %16 : vector<8x128xf32> to vector<1x8x128xf32>
    tpu.vector_store %arg5[%c0_9, %c0_10, %c0_11], %19 {strides = array<i32>} : memref<1x8x128xf32, #tpu.memory_space<vmem>>, vector<1x8x128xf32>,
    return
  }
  func.func @transform_0(%arg0: i32, %arg1: i32) -> (i32, i32, i32) {
    %c0_i32 = arith.constant 0 : i32
    %c0_i32_0 = arith.constant 0 : i32
    return %arg1, %arg0, %c0_i32 : i32, i32, i32
  }
  func.func @transform_1(%arg0: i32, %arg1: i32) -> (i32, i32, i32) {
    %c0_i32 = arith.constant 0 : i32
    %c0_i32_0 = arith.constant 0 : i32
    %c0_i32_1 = arith.constant 0 : i32
    return %c0_i32, %arg0, %c0_i32_0 : i32, i32, i32
  }
  func.func @transform_2(%arg0: i32, %arg1: i32) -> (i32, i32, i32) {
    %c0_i32 = arith.constant 0 : i32
    %c0_i32_0 = arith.constant 0 : i32
    %c0_i32_1 = arith.constant 0 : i32
    return %c0_i32, %arg0, %c0_i32_0 : i32, i32, i32
  }
  func.func @transform_3(%arg0: i32, %arg1: i32) -> (i32, i32, i32) {
    %c0_i32 = arith.constant 0 : i32
    %c0_i32_0 = arith.constant 0 : i32
    return %arg1, %arg0, %c0_i32 : i32, i32, i32
  }
}

</mosaic_0001>

<bundles_post_ra>
// kernel: tpu_custom_call.1
= control target key start
LH: loop header
LB: loop body
LE: loop exit
PB: predicated region body
PF: predicated region fallthrough
CT: control target
= control target key end

     0   :  { %8 = vsyncpa [#allocation3], 0  ;;  %s832_s0 = inlined_call_operand.hbm [shape: f32[2,8,128], index: 0, kind: input, shape index: {}]   ;;  %s833_s1 = inlined_call_operand.hbm [shape: f32[1,8,128], index: 1, kind: input, shape index: {}]   ;;  %s834_s2 = inlined_call_operand.hbm [shape: f32[1,8,128], index: 2, kind: input, shape index: {}]   ;;  %s835_s3 = inlined_call_operand.hbm [shape: f32[2,8,128], index: 3, kind: output, shape index: {}]  }
   0x1   :  { %10 = vsyncpa [#allocation3 + $0x1], 0 }
   0x2   :  { %11 = vsyncpa [#allocation6], 0 }
   0x3   :  { %12 = vsyncpa [#allocation4], 0 }
   0x4   :  { %14 = vsyncpa [#allocation4 + $0x1], 0  ;;  %s690_s12 = smov 0   ;;  %s692_s13 = smov 0  }
   0x5   :  { %s694_s14 = smov 0   ;;  %s696_s15 = smov 0  }
   0x6   :  { %s698_s16 = smov 0   ;;  %s700_s17 = smov 0  }
   0x7 LB: > { %s386_s18 = sadd.s32 4294967295, %s664_s17   ;;  %s387_s19 = sadd.s32 4294967294, %s664_s17   ;;  %s664_s17 = sphi %s700_s17, %s20_s17   ;;  %s660_s16 = sphi %s698_s16, %s845_s16   ;;  %s656_s15 = sphi %s696_s15, %s844_s15   ;;  %s652_s14 = sphi %s694_s14, %s843_s14   ;;  %s648_s13 = sphi %s692_s13, %s842_s13   ;;  %s644_s12 = sphi %s690_s12, %s841_s12  }
   0x8   : > { %p54_p0 = scmp.ne.s32.totalorder %s648_s13, %s644_s12  ;;  %p724_p1 = scmp.eq.s32.totalorder %s386_s18, 0 }
   0x9   : > { %p138_p2 = scmp.eq.s32.totalorder %s387_s19, 1  ;;  %p388_p4 = scmp.ge.s32.totalorder %s664_s17, 1 }
   0xa   : > { %p730_p3 = por %p724_p1, %p54_p0  ;;  %p145_p6 = scmp.lt.s32.totalorder %s664_s17, 3 }
   0xb   : > { %p735_p5 = por %p138_p2, %p54_p0  ;;  %s159_s25 = sshll.u32 %s833_s1, 4  ;;  %s160_s25 = int_to_ptr.hbm [resolvable:$true] %s159_s25 }
   0xc   : > { %p743_p7 = pnand %p388_p4, %p145_p6  ;;  %p391_p8 = scmp.ge.s32.totalorder %s664_s17, 2 }
   0xd   : > { %s666_s27 = smov [#allocation5]   ;;  %s173_s4 = sshll.u32 %s834_s2, 4  ;;  %s174_s4 = int_to_ptr.hbm [resolvable:$true] %s173_s4 }
   0xe   : > { %p415_p9 = pneg %p743_p7  ;;  %s161_s28 = sshll.u32 %s666_s27, 4  ;;  %s162_s28 = int_to_ptr.vmem [resolvable:$true] %s161_s28 }
   0xf   : > { %s667_s5 = smov [#allocation7]   ;;  %p132_p11 = scmp.eq.s32.totalorder %s386_s18, 1 }
  0x10   : > { %p416_p10 = pnand %p415_p9, %p724_p1  ;;  %s175_s6 = sshll.u32 %s667_s5, 4  ;;  %s176_s6 = int_to_ptr.vmem [resolvable:$true] %s175_s6 }
  0x11   : > { %s29_s7 = sadd.s32 1, %s660_s16  ;;  %s41_s8 = sadd.s32 1, %s652_s14 }
  0x12   : > { %418 = dma.hbm_to_vmem [thread:$0]  (!%p416_p10), %s160_s25, 128, %s162_s28, [#allocation6]  }
  0x13   : > { %421 = dma.hbm_to_vmem [thread:$0]  (!%p416_p10), %s174_s4, 128, %s176_s6, [#allocation6]  }
  0x14   : > { %p30_p12 = scmp.ge.s32.totalorder %s29_s7, 2  ;;  %p48_p13 = scmp.ne.s32.totalorder %s652_s14, %s648_s13 }
  0x15   : > { %p49_p0 = scmp.eq.s32.totalorder %s664_s17, 0  ;;  %p432_p4 = scmp.lt.s32.totalorder %s664_s17, 2 }
  0x16   : > { %s847_s7 = smov (%p30_p12, %s29_s7), 0  ;;  %p762_p2 = por %p132_p11, %p48_p13 }
  0x17   : > { %s36_s10 = ssub.s32 %s660_s16, %s847_s7  ;;  %s186_s11 = sand.u32 1, %s652_s14  }
  0x18   : > { %p39_p6 = scmp.eq.s32.totalorder %s36_s10, 0  ;;  %p50_p9 = por %p49_p0, %p48_p13 }
  0x19   : > { %s392_s19 = sshll.u32 %s186_s11, 3  ;;  %s393_s18 = sshll.u32 %s660_s16, 3 }
  0x1a   : > { %s772_s23 = scalar_select %p39_p6, %s652_s14, %s41_s8  }
  0x1b   : > { %s195_s27 = scalar_lea.hbm %s832_s0, %s393_s18  ;;  %s190_s29 = scalar_lea.vmem [#allocation2], %s392_s19 }
  0x1c   : > { %s197_s28 = sshll.u32 %s195_s27, 4  ;;  %s199_s30 = sshll.u32 %s190_s29, 4  ;;  %s198_s28 = int_to_ptr.hbm [resolvable:$true] %s197_s28  ;;  %s200_s30 = int_to_ptr.vmem [resolvable:$true] %s199_s30 }
  0x1d   : > { %p423_p10 = pnand %p432_p4, %p50_p9  ;;  %s187_s4 = scalar_lea.sflag [#allocation3], %s186_s11 }
  0x1e   : > { %208 = sbr.rel (%p743_p7) target bundleno = 173 (0xad), region = 32  ;;  %s782_s5 = sand.u32 (!%p743_p7), 1, %s648_s13  }
  0x1f   : > { %425 = dma.hbm_to_vmem [thread:$0]  (!%p423_p10), %s198_s28, 128, %s200_s30, %s187_s4  }
  0x20   : > { %s395_s6 = sshll.u32 (!%p743_p7), %s782_s5, 3  ;;  %s211_s8 = scalar_lea.sflag (!%p743_p7), [#allocation3], %s782_s5 }
  0x21   : > { %s214_s10 = scalar_lea.vmem (!%p743_p7), [#allocation2], %s395_s6 }
  0x23   : > { %631 = dma.done.wait (%p730_p3), %s211_s8, 128  }
  0x24   : > { %633 = vsyncadd (%p730_p3), %s211_s8, 4294967168 }
  0x25   : > { %635 = dma.done.wait (%p724_p1), [#allocation6], 256  }
  0x26   : > { %637 = vsyncadd (%p724_p1), [#allocation6], 4294967040  ;;  %v255_v0 = vlaneseq  ;;  %s668_s26 = smov 16   ;;  %v248_v2 = vld [vmem:[%s214_s10] sm:$0xff]  ;;  %s669_s11 = smov 112   ;;  %v249_v5 = vld [vmem:[#allocation5] sm:$0xff] }
  0x27   : > { %253 = vrot.lane.b32.xlu1 %v248_v2, %s669_s11  ;;  %s400_s19 = sshll.u32 %s656_s15, 3  ;;  %v250_v7 = vld [vmem:[#allocation7] sm:$0xff]  ;;  %v262_v8 = vmul.f32 %v249_v5, %v248_v2  ;;  %s247_s24 = scalar_lea.vmem [#allocation8], %s395_s6 }
  0x28   : > { %v256_v1 = vand.u32 127, %v255_v0  ;;  %s278_s20 = scalar_lea.hbm %s835_s3, %s400_s19  ;;  %s280_s25 = sshll.u32 %s247_s24, 4  ;;  %s281_s25 = int_to_ptr.vmem [resolvable:$true] %s280_s25 }
  0x29   : > { %s282_s27 = sshll.u32 %s278_s20, 4  ;;  %s267_s15 = scalar_lea.sflag [#allocation4], %s782_s5  ;;  %s283_s27 = int_to_ptr.hbm [resolvable:$true] %s282_s27 }
  0x2a   : > { %257 = vrot.lane.b32.xlu0 %v256_v1, %s668_s26  ;;  %s592_s28 = sshra.s32 %s283_s27, 4  ;;  %s598_s8 = scalar_lea.hbm %s835_s3, 16  ;;  %s593_s28 = int_to_ptr.hbm [resolvable:$true] %s592_s28 }
  0x2b   : > { %s594_s29 = scalar_lea.hbm %s593_s28, 8  ;;  %p599_p11 = scmp.lt.s32.totalorder %s593_s28, %s835_s3 }
  0x2c   : > { %p595_p1 = scmp.ne.s32.totalorder %s593_s28, %s594_s29  ;;  %p600_p12 = scmp.lt.s32.totalorder %s598_s8, %s594_s29 }
  0x2e   : > { %p596_p3 = pnand %p595_p1, %p762_p2  ;;  %p601_p13 = por %p600_p12, %p599_p11 }
  0x30   : > { %p597_p7 = pneg %p596_p3 }
  0x32   : > { %251 = vrot.lane.b32.xlu0 %v248_v2, %s668_s26  ;;  %p602_p0 = pnand %p601_p13, %p597_p7 }
  0x99   : > { %v254_v6 = vpop.permute.xlu1 %253 }
  0x9c   : > { %v258_v3 = vpop.permute.xlu0 %257 }
  0x9d   : > { %v259_v4 = vxor.u32 %v258_v3, %v256_v1 }
  0x9f   : > { %vm260_vm0 = vcmp.lt.s32.totalorder %v259_v4, 32 }
  0xa4   : > { %v252_v9 = vpop.permute.xlu0 %251 }
  0xa5   : > { %v261_v10 = vsel %vm260_vm0, %v252_v9, %v254_v6 }
  0xa6   : > { %v263_v11 = vmul.f32 %v261_v10, %v250_v7 }
  0xa8   : > { %v264_v12 = vadd.f32 %v263_v11, %v262_v8 }
  0xaa   : > { %265 = vst [vmem:[%s247_s24] sm:$0xff] %v264_v12 }
  0xab   : > { %605 = shalt.err (!%p602_p0)
}
  0xac   : > { %413 = dma.vmem_to_hbm [thread:$0]  (%p762_p2), %s281_s25, 128, %s283_s27, %s267_s15  }
  0xad PF: > { %s294_s5 = sand.u32 1, %s644_s12   ;;  %p427_p4 = pnand %p391_p8, %p735_p5 }
  0xae   : > { %s295_s26 = scalar_lea.sflag [#allocation4], %s294_s5 }
  0xaf   : > { %p428_p6 = pneg %p427_p4 }
  0xb1   : > { %639 = dma.done.wait (%p428_p6), %s295_s26, 128  }
  0xb2   : > { %641 = vsyncadd (%p428_p6), %s295_s26, 4294967168  ;;  %s20_s17 = sadd.s32 1, %s664_s17   ;;  %s841_s12 = smov %s648_s13 }
  0xb3   : > { %p17_p9 = scmp.ge.s32.totalorder %s20_s17, 4   ;;  %s842_s13 = smov %s652_s14 }
  0xb4   : > { %s843_s14 = smov %s772_s23  ;;  %s844_s15 = smov %s660_s16 }
  0xb5   : > { %s845_s16 = smov %s847_s7  ;;  %19 = sbr.rel (!%p17_p9) target bundleno = 7 (0x7), region = 87 }
  0xba   :  { %301 = vsyncpa [#allocation3], 1 }
  0xbb   :  { %303 = vsyncpa [#allocation3 + $0x1], 1 }
  0xbc   :  { %304 = vsyncpa [#allocation6], 1 }
  0xbd   :  { %305 = vsyncpa [#allocation4], 1 }
  0xbe   :  { %307 = vsyncpa [#allocation4 + $0x1], 1 }

</bundles_post_ra>
